<compile_context>
chip_gen: v7x
topology: tpu7x:2x2x1
jax: 0.10.0
libtpu: 0.0.40
codegen_flags: <defaults>
</compile_context>

<pallas_src>
import jax
import jax.numpy as jnp
from jax.experimental import pallas as pl
from jax.experimental.pallas import tpu as pltpu

LN_EPS = 1e-5  # nn.LayerNorm default


def spex_kernel(x_ref, w_ref, b_ref, o_ref):
    """LayerNorm(C) -> fused (1x1 conv -> 3x mask 1x1 conv) -> ReLU for one (b, t) tile.

    Ref shapes (batch dim squeezed away by the BlockSpecs):
      x_ref : (Cin, tT)        bf16  NCL input tile
      w_ref : (3*enc, Cin)     bf16  LN-affine + conv + mask heads folded (f32 fold in wrapper)
      b_ref : (3*enc, 1)       f32   folded bias
      o_ref : (3*enc, tT)      bf16  fused NCL output tile (lane-dense)
    """
    x = x_ref[...].astype(jnp.float32)
    # One-pass LayerNorm statistics over the channel (sublane) axis, in f32.
    mu = jnp.mean(x, axis=0, keepdims=True)
    ex2 = jnp.mean(x * x, axis=0, keepdims=True)
    var = ex2 - mu * mu
    xn = (x - mu) * jax.lax.rsqrt(var + LN_EPS)
    # TODO(synk): StackedTCN's class definition is not provided in the reference
    # module, so the TCN stack (and its speaker_emb conditioning) is treated as
    # identity here; the conv->mask matmul fusion below must be undone once a
    # real StackedTCN sits between them.
    # Single (3*enc, Cin) @ (Cin, tT) MXU matmul: bf16 operands, f32 accumulation.
    m = jnp.dot(w_ref[...], xn.astype(jnp.bfloat16),
                preferred_element_type=jnp.float32) + b_ref[...]
    o_ref[...] = jnp.maximum(m, 0.0).astype(o_ref.dtype)


def _pick_t_tile(T, cap=2048):
    """Lane-dense time tile: multiple of 128, as large as possible up to `cap`.

    T is padded UP to a multiple of the tile in the wrapper (pad + slice is far
    cheaper than running a tiny-tile, low-roofline kernel).
    """
    t128 = ((T + 127) // 128) * 128
    return min(cap, t128)


def speech_extractor_forward(x_ncl, speaker_emb, params, *, t_tile=None,
                             out_dtype=jnp.bfloat16):
    """x_ncl: (B, 3*encoder_dim, T) NCL. Returns 3 masks, each (B, encoder_dim, T) NCL."""
    del speaker_emb  # only consumed by the (omitted) StackedTCN blocks
    B, Cin, T = x_ncl.shape
    tcn_dim = params["w_conv"].shape[0]
    enc = params["w_mask0"].shape[0]
    assert Cin == 3 * enc

    if t_tile is None:
        t_tile = _pick_t_tile(T)
    assert t_tile % 128 == 0
    T_pad = ((T + t_tile - 1) // t_tile) * t_tile

    # HBM input in bf16 (kernel is mem-bound); LN statistics are done in f32 in-kernel.
    x = x_ncl.astype(jnp.bfloat16)
    if T_pad != T:
        x = jnp.pad(x, ((0, 0), (0, 0), (0, T_pad - T)))

    # ---- Weight folding (all in f32, cast to bf16 only at the very end) ----
    # 1) Fold LayerNorm affine into the first 1x1 conv:
    #      wc' = w_conv * gamma^T ;  bc' = b_conv + w_conv @ beta
    gamma = params["ln_gamma"].reshape(-1).astype(jnp.float32)          # (Cin,)
    beta = params["ln_beta"].reshape(-1).astype(jnp.float32)            # (Cin,)
    wc = params["w_conv"].astype(jnp.float32)                           # (tcn, Cin)
    bc = params["b_conv"].reshape(-1, 1).astype(jnp.float32)            # (tcn, 1)
    wc_f = wc * gamma[None, :]
    bc_f = bc + wc @ beta[:, None]
    # 2) While the TCN stack is identity, fuse conv and the three mask heads:
    #      W = [w_mask0;w_mask1;w_mask2] @ wc' ;  b = [..] @ bc' + [b_mask*]
    wm = jnp.concatenate([params[f"w_mask{i}"] for i in range(3)],
                         axis=0).astype(jnp.float32)                    # (3*enc, tcn)
    bm = jnp.concatenate([params[f"b_mask{i}"].reshape(-1, 1) for i in range(3)],
                         axis=0).astype(jnp.float32)                    # (3*enc, 1)
    w_fused = (wm @ wc_f).astype(jnp.bfloat16)                          # (3*enc, Cin)
    b_fused = (wm @ bc_f + bm).astype(jnp.float32)                      # (3*enc, 1)

    def full_spec(shape):
        return pl.BlockSpec(shape, lambda b, t: (0,) * len(shape))

    in_specs = [
        # x tile: batch dim squeezed, full channel extent, lane-dense time tile.
        pl.BlockSpec((None, Cin, t_tile), lambda b, t: (b, 0, t)),
        full_spec((3 * enc, Cin)),   # fused weight (resident across grid)
        full_spec((3 * enc, 1)),     # fused bias
    ]
    out_spec = pl.BlockSpec((None, 3 * enc, t_tile), lambda b, t: (b, 0, t))

    # Per-step VMEM (double-buffered bf16 x tile + bf16 fused output tile +
    # resident weights + f32 intermediates) is a few MiB at t_tile=2048, well
    # under the default scoped VMEM limit on v5e/v6e/v7x.
    # Grid has B * (T_pad // t_tile) steps; keep it >= 2 so v7x's second
    # TensorCore is used via the "parallel" dimension semantics.
    fused = pl.pallas_call(
        spex_kernel,
        out_shape=jax.ShapeDtypeStruct((B, 3 * enc, T_pad), out_dtype),
        grid=(B, T_pad // t_tile),
        in_specs=in_specs,
        out_specs=out_spec,
        compiler_params=pltpu.CompilerParams(
            dimension_semantics=("parallel", "parallel")),
    )(x, w_fused, b_fused)

    if T_pad != T:
        fused = fused[:, :, :T]
    # Cheap NCL slices (fuse with downstream consumers under jit).
    return (fused[:, :enc, :], fused[:, enc:2 * enc, :], fused[:, 2 * enc:, :])


def init_params(key, encoder_dim, tcn_dim):
    """Deterministic synthetic parameters (shapes follow the nn.Module __init__)."""
    Cin = 3 * encoder_dim
    ks = jax.random.split(key, 8)
    scale = 0.02
    params = {
        # nn.LayerNorm(3*encoder_dim): gamma=1, beta=0
        "ln_gamma": jnp.ones((Cin,), jnp.float32),
        "ln_beta": jnp.zeros((Cin,), jnp.float32),
        # nn.Conv1d(3*encoder_dim, tcn_dim, 1): weight (out, in, 1) stored as (out, in)
        "w_conv": scale * jax.random.normal(ks[0], (tcn_dim, Cin), jnp.float32),
        "b_conv": scale * jax.random.normal(ks[1], (tcn_dim, 1), jnp.float32),
    }
    for i in range(3):
        # nn.Conv1d(tcn_dim, encoder_dim, 1) stored as (encoder_dim, tcn_dim)
        params[f"w_mask{i}"] = scale * jax.random.normal(
            ks[2 + 2 * i], (encoder_dim, tcn_dim), jnp.float32)
        params[f"b_mask{i}"] = scale * jax.random.normal(
            ks[3 + 2 * i], (encoder_dim, 1), jnp.float32)
    return params


def _reference(x_ncl, params):
    """Pure-JAX f32 reference of the original (unfolded) op chain (TCN = identity)."""
    x = x_ncl.astype(jnp.float32)
    xt = jnp.transpose(x, (0, 2, 1))                              # (B, T, Cin)
    mu = jnp.mean(xt, axis=-1, keepdims=True)
    var = jnp.mean((xt - mu) ** 2, axis=-1, keepdims=True)
    xn = (xt - mu) / jnp.sqrt(var + LN_EPS)
    xn = xn * params["ln_gamma"] + params["ln_beta"]
    out = jnp.transpose(xn, (0, 2, 1))                            # (B, Cin, T)
    h = jnp.einsum("oi,bit->bot", params["w_conv"], out) + params["b_conv"][None]
    masks = []
    for i in range(3):
        mi = (jnp.einsum("oi,bit->bot", params[f"w_mask{i}"], h)
              + params[f"b_mask{i}"][None])
        masks.append(jnp.maximum(mi, 0.0))
    return masks


if __name__ == "__main__":
    # small shapes consistent with the module
    encoder_dim, tcn_dim, speaker_dim = 32, 64, 16
    n_stacked_tcn, n_tcn_blocks, kernel_size = 2, 2, 3  # unused: TCN stack omitted (see TODO)
    B, T = 2, 200   # T not a multiple of 128 -> exercises the pad + slice path

    key = jax.random.PRNGKey(0)
    kx, ke, kp = jax.random.split(key, 3)
    x_f32 = jax.random.normal(kx, (B, 3 * encoder_dim, T), jnp.float32)   # NCL like PyTorch
    speaker_emb = jax.random.normal(ke, (B, speaker_dim), jnp.float32)
    params = init_params(kp, encoder_dim, tcn_dim)

    # Production path stores activations in bf16 in HBM; quantize once here so
    # the correctness check isolates kernel error from input quantization.
    x = x_f32.astype(jnp.bfloat16)

    masks = speech_extractor_forward(x, speaker_emb, params)
    masks = [jax.block_until_ready(m) for m in masks]

    assert len(masks) == 3
    assert all(m.shape == (B, encoder_dim, T) for m in masks)
    assert all(bool(jnp.all(m.astype(jnp.float32) >= 0.0)) for m in masks)  # ReLU outputs

    # numerical check vs pure-JAX f32 reference on the same (bf16-quantized) input
    refs = _reference(x.astype(jnp.float32), params)
    for got, want in zip(masks, refs):
        err = float(jnp.max(jnp.abs(got.astype(jnp.float32) - want)))
        assert err < 2e-2, f"max abs error {err}"

    print("KERNEL_OK")
</pallas_src>

<mosaic_0001>
module attributes {stable_mosaic.version = 11 : i64} {
  func.func @spex_kernel(%arg0: i32, %arg1: i32, %arg2: memref<1x96x256xbf16, #tpu.memory_space<vmem>>, %arg3: memref<96x96xbf16, #tpu.memory_space<vmem>>, %arg4: memref<96x1xf32, #tpu.memory_space<vmem>>, %arg5: memref<1x96x256xbf16, #tpu.memory_space<vmem>>) attributes {dimension_semantics = [#tpu.dimension_semantics<parallel>, #tpu.dimension_semantics<parallel>], iteration_bounds = array<i64: 2, 1>, scalar_prefetch = 0 : i64, scratch_operands = 0 : i64, tpu.core_type = #tpu.core_type<tc>, window_params = [{transform_indices = @transform_0, window_bounds = array<i64: 1, 96, 256>}, {pipeline_mode = #tpu.pipeline_mode<synchronous>, transform_indices = @transform_1, window_bounds = array<i64: 96, 96>}, {pipeline_mode = #tpu.pipeline_mode<synchronous>, transform_indices = @transform_2, window_bounds = array<i64: 96, 1>}, {transform_indices = @transform_3, window_bounds = array<i64: 1, 96, 256>}]} {
    %c0 = arith.constant 0 : index
    %c0_0 = arith.constant 0 : index
    %c0_1 = arith.constant 0 : index
    %0 = vector.load %arg2[%c0, %c0_0, %c0_1] : memref<1x96x256xbf16, #tpu.memory_space<vmem>>, vector<1x96x256xbf16>
    %1 = vector.shape_cast %0 : vector<1x96x256xbf16> to vector<96x256xbf16>
    %2 = arith.extf %1 : vector<96x256xbf16> to vector<96x256xf32>
    %cst = arith.constant dense<0.000000e+00> : vector<256xf32>
    %3 = vector.multi_reduction <add>, %2, %cst [0] : vector<96x256xf32> to vector<256xf32>
    %4 = vector.shape_cast %3 : vector<256xf32> to vector<1x256xf32>
    %cst_2 = arith.constant 9.600000e+01 : f32
    %5 = vector.broadcast %cst_2 : f32 to vector<1x256xf32>
    %6 = arith.divf %4, %5 : vector<1x256xf32>
    %7 = arith.mulf %2, %2 : vector<96x256xf32>
    %cst_3 = arith.constant dense<0.000000e+00> : vector<256xf32>
    %8 = vector.multi_reduction <add>, %7, %cst_3 [0] : vector<96x256xf32> to vector<256xf32>
    %9 = vector.shape_cast %8 : vector<256xf32> to vector<1x256xf32>
    %cst_4 = arith.constant 9.600000e+01 : f32
    %10 = vector.broadcast %cst_4 : f32 to vector<1x256xf32>
    %11 = arith.divf %9, %10 : vector<1x256xf32>
    %12 = arith.mulf %6, %6 : vector<1x256xf32>
    %13 = arith.subf %11, %12 : vector<1x256xf32>
    %14 = vector.broadcast %6 : vector<1x256xf32> to vector<96x256xf32>
    %15 = arith.subf %2, %14 : vector<96x256xf32>
    %cst_5 = arith.constant 9.99999974E-6 : f32
    %16 = vector.broadcast %cst_5 : f32 to vector<1x256xf32>
    %17 = arith.addf %13, %16 : vector<1x256xf32>
    %18 = math.rsqrt %17 : vector<1x256xf32>
    %19 = vector.broadcast %18 : vector<1x256xf32> to vector<96x256xf32>
    %20 = arith.mulf %15, %19 : vector<96x256xf32>
    %c0_6 = arith.constant 0 : index
    %c0_7 = arith.constant 0 : index
    %21 = vector.load %arg3[%c0_6, %c0_7] : memref<96x96xbf16, #tpu.memory_space<vmem>>, vector<96x96xbf16>
    %22 = arith.truncf %20 : vector<96x256xf32> to vector<96x256xbf16>
    %cst_8 = arith.constant dense<0.000000e+00> : vector<96x256xf32>
    %23 = tpu.matmul %21, %22, %cst_8 {dimension_numbers = #tpu.dot_dimension_numbers<[1], [0], [0], [1], [0, 0, 1, 1], [], []>} : vector<96x96xbf16>, vector<96x256xbf16>, vector<96x256xf32> -> vector<96x256xf32>
    %c0_9 = arith.constant 0 : index
    %c0_10 = arith.constant 0 : index
    %24 = vector.load %arg4[%c0_9, %c0_10] : memref<96x1xf32, #tpu.memory_space<vmem>>, vector<96x1xf32>
    %25 = vector.broadcast %24 : vector<96x1xf32> to vector<96x256xf32>
    %26 = arith.addf %23, %25 : vector<96x256xf32>
    %cst_11 = arith.constant 0.000000e+00 : f32
    %27 = vector.broadcast %cst_11 : f32 to vector<96x256xf32>
    %28 = arith.maximumf %26, %27 : vector<96x256xf32>
    %29 = arith.truncf %28 : vector<96x256xf32> to vector<96x256xbf16>
    %c0_12 = arith.constant 0 : index
    %c0_13 = arith.constant 0 : index
    %c0_14 = arith.constant 0 : index
    %30 = vector.load %arg5[%c0_12, %c0_13, %c0_14] : memref<1x96x256xbf16, #tpu.memory_space<vmem>>, vector<1x96x256xbf16>
    %31 = vector.shape_cast %30 : vector<1x96x256xbf16> to vector<96x256xbf16>
    %32 = vector.shape_cast %29 : vector<96x256xbf16> to vector<1x96x256xbf16>
    tpu.vector_store %arg5[%c0_12, %c0_13, %c0_14], %32 {strides = array<i32>} : memref<1x96x256xbf16, #tpu.memory_space<vmem>>, vector<1x96x256xbf16>,
    return
  }
  func.func @transform_0(%arg0: i32, %arg1: i32) -> (i32, i32, i32) {
    %c0_i32 = arith.constant 0 : i32
    %c0_i32_0 = arith.constant 0 : i32
    return %arg0, %c0_i32, %arg1 : i32, i32, i32
  }
  func.func @transform_1(%arg0: i32, %arg1: i32) -> (i32, i32) {
    %c0_i32 = arith.constant 0 : i32
    %c0_i32_0 = arith.constant 0 : i32
    %c0_i32_1 = arith.constant 0 : i32
    return %c0_i32, %c0_i32_0 : i32, i32
  }
  func.func @transform_2(%arg0: i32, %arg1: i32) -> (i32, i32) {
    %c0_i32 = arith.constant 0 : i32
    %c0_i32_0 = arith.constant 0 : i32
    %c0_i32_1 = arith.constant 0 : i32
    return %c0_i32, %c0_i32_0 : i32, i32
  }
  func.func @transform_3(%arg0: i32, %arg1: i32) -> (i32, i32, i32) {
    %c0_i32 = arith.constant 0 : i32
    %c0_i32_0 = arith.constant 0 : i32
    return %arg0, %c0_i32, %arg1 : i32, i32, i32
  }
}

</mosaic_0001>

<bundles_post_ra>
// kernel: tpu_custom_call.1
= control target key start
LH: loop header
LB: loop body
LE: loop exit
PB: predicated region body
PF: predicated region fallthrough
CT: control target
= control target key end

     0   :  { %8 = vsyncpa [#allocation3], 0  ;;  %s1650_s0 = inlined_call_operand.hbm [shape: bf16[2,96,256], index: 0, kind: input, shape index: {}]   ;;  %s1651_s1 = inlined_call_operand.vmem [shape: bf16[96,96], index: 1, kind: input, shape index: {}]   ;;  %s1652_s2 = inlined_call_operand.vmem [shape: f32[96,1], index: 2, kind: input, shape index: {}]   ;;  %s1653_s3 = inlined_call_operand.hbm [shape: bf16[2,96,256], index: 3, kind: output, shape index: {}]  }
   0x1   :  { %10 = vsyncpa [#allocation3 + $0x1], 0 }
   0x2   :  { %11 = vsyncpa [#allocation4], 0 }
   0x3   :  { %13 = vsyncpa [#allocation4 + $0x1], 0  ;;  %s1158_s12 = smov 0   ;;  %s1160_s13 = smov 0  }
   0x4   :  { %s1162_s14 = smov 0   ;;  %s1164_s15 = smov 0  }
   0x5   :  { %s1166_s16 = smov 0   ;;  %s1168_s17 = smov 0  }
   0x6 LB: > { %s848_s18 = sadd.s32 4294967295, %s1128_s17   ;;  %s849_s19 = sadd.s32 4294967294, %s1128_s17   ;;  %s1128_s17 = sphi %s1168_s17, %s19_s17   ;;  %s1124_s16 = sphi %s1166_s16, %s1668_s16   ;;  %s1120_s15 = sphi %s1164_s15, %s1667_s15   ;;  %s1116_s14 = sphi %s1162_s14, %s1666_s14   ;;  %s1112_s13 = sphi %s1160_s13, %s1665_s13   ;;  %s1108_s12 = sphi %s1158_s12, %s1664_s12  }
   0x7   : > { %s31_s20 = sadd.s32 1, %s1124_s16  ;;  %s40_s21 = sadd.s32 1, %s1116_s14 }
   0x8   : > { %p33_p0 = scmp.ge.s32.totalorder %s31_s20, 2  ;;  %p47_p1 = scmp.ne.s32.totalorder %s1116_s14, %s1112_s13 }
   0x9   : > { %p48_p2 = scmp.eq.s32.totalorder %s1128_s17, 0  ;;  %p53_p3 = scmp.ne.s32.totalorder %s1112_s13, %s1108_s12 }
   0xa   : > { %s1670_s20 = smov (%p33_p0, %s31_s20), 0  ;;  %p54_p5 = scmp.eq.s32.totalorder %s848_s18, 0 }
   0xb   : > { %p1199_p4 = por %p48_p2, %p47_p1  ;;  %s35_s23 = ssub.s32 %s1124_s16, %s1670_s20 }
   0xc   : > { %p121_p6 = scmp.eq.s32.totalorder %s848_s18, 1  ;;  %p38_p7 = scmp.eq.s32.totalorder %s35_s23, 0 }
   0xd   : > { %p1205_p8 = por %p54_p5, %p53_p3  ;;  %p127_p10 = scmp.eq.s32.totalorder %s849_s19, 1 }
   0xe   : > { %p1209_p9 = por %p121_p6, %p47_p1  ;;  %p921_p13 = scmp.lt.s32.totalorder %s1128_s17, 2 }
   0xf   : > { %s1214_s26 = scalar_select %p38_p7, %s1116_s14, %s40_s21  }
  0x10   : > { %s1657_s25 = scalar_select %p1209_p9, 1, 0 }
  0x11   : > { %p1216_p11 = por %p127_p10, %p53_p3  ;;  %s153_s28 = sand.u32 1, %s1116_s14  }
  0x12   : > { %s905_s29 = smul.u32 96, %s153_s28  ;;  %p1226_p0 = pnand %p921_p13, %p1199_p4 }
  0x13   : > { %s1658_s27 = scalar_select %p1216_p11, 1, 0 }
  0x14   : > { %s906_s30 = smul.u32 1536, %s1124_s16  ;;  %s157_s8 = scalar_lea.vmem [#allocation2], %s905_s29 }
  0x15   : > { %s166_s9 = sshll.u32 %s157_s8, 4  ;;  %s1238_s10 = scalar_lea.sflag [#allocation3], %s153_s28  ;;  %s1235_s9 = int_to_ptr.vmem [resolvable:$true] %s166_s9 }
  0x16   : > { %s1233_s7 = scalar_lea.hbm %s1650_s0, %s906_s30  ;;  %p990_p3 = pneg %p1226_p0 }
  0x17   : > { %s988_s11 = scalar_lea.hbm %s1233_s7, 1536  ;;  %s993_s21 = scalar_lea.hbm %s1650_s0, 3072 }
  0x18   : > { %p989_p2 = scmp.ne.s32.totalorder %s1233_s7, %s988_s11  ;;  %p994_p6 = scmp.lt.u32.totalorder %s1233_s7, %s1650_s0 }
  0x19   : > { %p995_p7 = scmp.lt.u32.totalorder %s993_s21, %s988_s11  ;;  %p997_p13 = scmp.lt.u32.totalorder %s988_s11, %s1233_s7 }
  0x1a   : > { %p991_p4 = pnand %p990_p3, %p989_p2 }
  0x1b   : > { %p996_p10 = por %p995_p7, %p994_p6 }
  0x1c   : > { %p992_p5 = pneg %p991_p4 }
  0x1d   : > { %p998_p12 = por %p997_p13, %p996_p10 }
  0x1f   : > { %p999_p1 = pnand %p998_p12, %p992_p5 }
  0x21   : > { %1002 = shalt.err (!%p999_p1)
}
  0x22   : > { %s1003_s28 = scalar_lea.vmem %s1235_s9, 1536  ;;  %s1130_s29 = smov [#allocation2]  }
  0x23   : > { %p1004_p2 = scmp.ne.s32.totalorder %s1235_s9, %s1003_s28  ;;  %s1008_s30 = sshll.u32 %s1130_s29, 4  ;;  %s1009_s30 = int_to_ptr.vmem [resolvable:$false] %s1008_s30 }
  0x24   : > { %s1010_s5 = scalar_lea.vmem %s1009_s30, 3072  ;;  %p1011_p9 = scmp.lt.s32.totalorder %s1235_s9, %s1009_s30 }
  0x25   : > { %p1006_p4 = pnand %p1004_p2, %p990_p3  ;;  %p1012_p6 = scmp.lt.s32.totalorder %s1010_s5, %s1003_s28 }
  0x27   : > { %p1007_p11 = pneg %p1006_p4  ;;  %p1013_p7 = por %p1012_p6, %p1011_p9 }
  0x29   : > { %p1014_p10 = pnand %p1013_p7, %p1007_p11 }
  0x2b   : > { %1017 = shalt.err (!%p1014_p10)
}
  0x2c   : > { %s1131_s6 = smov 128   ;;  %s1132_s8 = smov 8  }
  0x2d   : > { %916 = dma.hbm_to_vmem [thread:$0]  (!%p1226_p0), %s1233_s7, 1536, %s1235_s9, %s1238_s10, %s1131_s6, %s1131_s6, %s1132_s8  }
  0x2e   : > { %p174_p12 = scmp.lt.s32.totalorder %s1128_s17, 3  ;;  %p1660_p1 = scmp.ge.s32.totalorder %s1128_s17, 1 }
  0x30   : > { %p175_p3 = pnand %p1660_p1, %p174_p12 }
  0x31   : > { %s1270_s11 = sand.u32 (!%p175_p3), 1, %s1112_s13  }
  0x32   : > { %178 = sbr.rel (%p175_p3) target bundleno = 395 (0x18b), region = 32  ;;  %s181_s19 = scalar_lea.sflag (!%p175_p3), [#allocation3], %s1270_s11 }
  0x33   : > { %s907_s18 = smul.u32 (!%p175_p3), 96, %s1270_s11 }
  0x35   : > { %s1276_s21 = scalar_lea.vmem (!%p175_p3), [#allocation2], %s907_s18 }
  0x39   : > { %1071 = dma.done.wait (%p1205_p8), %s181_s19, 1536  }
  0x3a   : > { %1073 = vsyncadd (%p1205_p8), %s181_s19, 4294965760  ;;  %v1133_v0 = vmov 0   ;;  %v1287_v1 = vld [vmem:[%s1276_s21] sm:$0xff]  ;;  %v1290_v2 = vld [vmem:[%s1276_s21 + $0x8] sm:$0xff]  ;;  %vm525_vm0 = vcmask 785408   ;;  %s1576_s23 = scalar_lea.vmem [#allocation5], %s907_s18 }
  0x3b   : > { %576 = vmatprep.mubr.bf16.mxu0 %v1133_v0  ;;  %606 = vmatprep.mubr.bf16.mxu1 %v1133_v0  ;;  %v1293_v3 = vld [vmem:[%s1276_s21 + $0x10] sm:$0xff]  ;;  %v1296_v4 = vld [vmem:[%s1276_s21 + $0x18] sm:$0xff]  ;;  %v223_v5 = vunpack.c.h.bf16 %v1287_v1  ;;  %v225_v6 = vunpack.c.h.bf16 %v1290_v2  ;;  %v1302_v8 = vld [vmem:[%s1276_s21 + $0x20] sm:$0xff]  ;;  %v222_v17 = vunpack.c.l.bf16 %v1287_v1  ;;  %v224_v18 = vunpack.c.l.bf16 %v1290_v2  ;;  %s908_s18 = smul.u32 1536, %s1120_s15  ;;  %s761_s28 = sshll.u32 %s1576_s23, 4  ;;  %s1597_s28 = int_to_ptr.vmem [resolvable:$true] %s761_s28 }
  0x3c   : > { %977 = vset.pattern.permute.xlu1 %v1133_v0  ;;  %976 = vset.pattern.permute.xlu0 %v1133_v0  ;;  %v227_v7 = vunpack.c.h.bf16 %v1293_v3  ;;  %v229_v9 = vunpack.c.h.bf16 %v1296_v4  ;;  %v1310_v11 = vld [vmem:[%s1276_s21 + $0x28] sm:$0xff]  ;;  %v231_v12 = vunpack.c.h.bf16 %v1302_v8  ;;  %v1316_v14 = vld [vmem:[%s1276_s21 + $0x30] sm:$0xff]  ;;  %v1324_v19 = vld [vmem:[%s1276_s21 + $0x38] sm:$0xff]  ;;  %1078 = vmul.bf16.f32.vacc0 %v1287_v1, %v1287_v1  ;;  %s746_s5 = scalar_lea.sflag [#allocation4], %s1270_s11  ;;  %s1018_s6 = scalar_lea.vmem %s1597_s28, 1536 }
  0x3d   : > { %v263_v10 = vadd.f32 %v225_v6, %v223_v5  ;;  %v233_v15 = vunpack.c.h.bf16 %v1310_v11  ;;  %1079 = vmac.bf16.f32.vacc0 %v1290_v2, %v1290_v2  ;;  %v235_v20 = vunpack.c.h.bf16 %v1316_v14  ;;  %v1335_v23 = vld [vmem:[%s1276_s21 + $0x40] sm:$0xff]  ;;  %v425_v24 = vld [vmem:[%s1652_s2 + $0x10] sm:$0xff]  ;;  %v1354_v30 = vld [vmem:[%s1276_s21 + $0x48] sm:$0xff]  ;;  %s1595_s15 = scalar_lea.hbm %s1653_s3, %s908_s18  ;;  %p1019_p8 = scmp.ne.s32.totalorder %s1597_s28, %s1018_s6 }
  0x3e   : > { %v226_v22 = vunpack.c.l.bf16 %v1293_v3  ;;  %1080 = vmac.bf16.f32.vacc0 %v1293_v3, %v1293_v3  ;;  %v423_v25 = vld [vmem:[%s1652_s2] sm:$0xff]  ;;  %v237_v26 = vunpack.c.h.bf16 %v1324_v19  ;;  %v228_v28 = vunpack.c.l.bf16 %v1296_v4  ;;  %447 = vperm.xlu1 %977, %v425_v24   ;;  %v426_v31 = vld [vmem:[%s1652_s2 + $0x18] sm:$0xff]  ;;  %v424_v36 = vld [vmem:[%s1652_s2 + $0x8] sm:$0xff]  ;;  %p1661_p9 = scmp.ne.s32.totalorder %s1657_s25, 0  ;;  %s1135_s8 = smov [#allocation5]  }
  0x3f   : > { %v264_v13 = vadd.f32 %v263_v10, %v227_v7  ;;  %v246_v29 = vadd.f32 %v224_v18, %v222_v17  ;;  %437 = vperm.xlu0 %976, %v423_v25   ;;  %1081 = vmac.bf16.f32.vacc0 %v1296_v4, %v1296_v4  ;;  %v239_v32 = vunpack.c.h.bf16 %v1335_v23  ;;  %v1371_v37 = vld [vmem:[%s1276_s21 + $0x50] sm:$0xff]  ;;  %v1382_v42 = vld [vmem:[%s1276_s21 + $0x58] sm:$0xff]  ;;  %v428_v43 = vld [vmem:[%s1652_s2 + $0x28] sm:$0xff]  ;;  %s1022_s19 = sshll.u32 %s1135_s8, 4  ;;  %s1023_s19 = int_to_ptr.vmem [resolvable:$false] %s1022_s19 }
  0x40   : > { %v230_v34 = vunpack.c.l.bf16 %v1302_v8  ;;  %1082 = vmac.bf16.f32.vacc0 %v1302_v8, %v1302_v8  ;;  %v241_v38 = vunpack.c.h.bf16 %v1354_v30  ;;  %v232_v40 = vunpack.c.l.bf16 %v1310_v11  ;;  %v427_v48 = vld [vmem:[%s1652_s2 + $0x20] sm:$0xff]  ;;  %v430_v53 = vld [vmem:[%s1652_s2 + $0x38] sm:$0xff]  ;;  %v429_v57 = vld [vmem:[%s1652_s2 + $0x30] sm:$0xff]  ;;  %p1020_p11 = pnand %p1019_p8, %p1661_p9  ;;  %s1024_s21 = scalar_lea.vmem %s1023_s19, 3072 }
  0x41   : > { %v265_v16 = vadd.f32 %v264_v13, %v229_v9  ;;  %v247_v35 = vadd.f32 %v246_v29, %v226_v22  ;;  %1083 = vmac.bf16.f32.vacc0 %v1310_v11, %v1310_v11  ;;  %v243_v44 = vunpack.c.h.bf16 %v1371_v37  ;;  %v432_v61 = vld [vmem:[%s1652_s2 + $0x48] sm:$0xff]  ;;  %v431_v13 = vld [vmem:[%s1652_s2 + $0x40] sm:$0xff]  ;;  %p1025_p5 = scmp.lt.s32.totalorder %s1597_s28, %s1023_s19  ;;  %p1026_p13 = scmp.lt.s32.totalorder %s1024_s21, %s1018_s6 }
  0x42   : > { %452 = vperm.xlu1 %977, %v426_v31   ;;  %v234_v46 = vunpack.c.l.bf16 %v1316_v14  ;;  %1084 = vmac.bf16.f32.vacc0 %v1316_v14, %v1316_v14  ;;  %v245_v49 = vunpack.c.h.bf16 %v1382_v42  ;;  %v236_v51 = vunpack.c.l.bf16 %v1324_v19  ;;  %p1021_p0 = pneg %p1020_p11 }
  0x43   : > { %v266_v21 = vadd.f32 %v265_v16, %v231_v12  ;;  %v248_v41 = vadd.f32 %v247_v35, %v228_v28  ;;  %442 = vperm.xlu0 %976, %v424_v36   ;;  %1085 = vmac.bf16.f32.vacc0 %v1324_v19, %v1324_v19  ;;  %v238_v55 = vunpack.c.l.bf16 %v1335_v23  ;;  %p1027_p2 = por %p1026_p13, %p1025_p5 }
  0x44   : > { %1086 = vmac.bf16.f32.vacc0 %v1335_v23, %v1335_v23  ;;  %v240_v59 = vunpack.c.l.bf16 %v1354_v30  ;;  %v242_v63 = vunpack.c.l.bf16 %v1371_v37 }
  0x45   : > { %v267_v27 = vadd.f32 %v266_v21, %v233_v15  ;;  %v249_v47 = vadd.f32 %v248_v41, %v230_v34  ;;  %1087 = vmac.bf16.f32.vacc0 %v1354_v30, %v1354_v30  ;;  %v244_v21 = vunpack.c.l.bf16 %v1382_v42  ;;  %p1028_p4 = pnand %p1027_p2, %p1021_p0 }
  0x46   : > { %462 = vperm.xlu1 %977, %v428_v43   ;;  %1088 = vmac.bf16.f32.vacc0 %v1371_v37, %v1371_v37 }
  0x47   : > { %v268_v33 = vadd.f32 %v267_v27, %v235_v20  ;;  %v250_v52 = vadd.f32 %v249_v47, %v232_v40  ;;  %457 = vperm.xlu0 %976, %v427_v48   ;;  %1089 = vmac.bf16.f32.vacc0 %v1382_v42, %v1382_v42  ;;  %v434_v48 = vld [vmem:[%s1652_s2 + $0x58] sm:$0xff] }
  0x49   : > { %v269_v39 = vadd.f32 %v268_v33, %v237_v26  ;;  %v251_v56 = vadd.f32 %v250_v52, %v234_v46  ;;  %v1090_v25 = vmovacc.add.low.vacc0  ;;  %v1134_v33 = vmov 1935823168  }
  0x4a   : > { %472 = vperm.xlu1 %977, %v430_v53   ;;  %v1091_v27 = vmovacc.add.high.vacc0  ;;  %v1094_v35 = vunpack.c.l.s4 %v1134_v33  ;;  %v433_v53 = vld [vmem:[%s1652_s2 + $0x50] sm:$0xff] }
  0x4b   : > { %v270_v45 = vadd.f32 %v269_v39, %v239_v32  ;;  %v252_v60 = vadd.f32 %v251_v56, %v236_v51  ;;  %467 = vperm.xlu0 %976, %v429_v57   ;;  %v1096_v39 = vlaneseq }
  0x4c   : > { %v1092_v29 = vcombine.low %v1090_v25, %v1091_v27  ;;  %v1093_v31 = vcombine.high %v1090_v25, %v1091_v27  ;;  %v1095_v36 = vunpack.c.0.s8 %v1094_v35 }
  0x4d   : > { %v271_v50 = vadd.f32 %v270_v45, %v241_v38  ;;  %v253_v10 = vadd.f32 %v252_v60, %v238_v55  ;;  %v1097_v41 = vshrl.u32 %v1096_v39, 7 }
  0x4e   : > { %482 = vperm.xlu1 %977, %v432_v61  }
  0x4f   : > { %v272_v54 = vadd.f32 %v271_v50, %v243_v44  ;;  %v254_v24 = vadd.f32 %v253_v10, %v240_v59  ;;  %v1098_v43 = vsub.s32 %v1095_v36, %v1097_v41  ;;  %477 = vperm.xlu0 %976, %v431_v13  }
  0x51   : > { %v273_v58 = vadd.f32 %v272_v54, %v245_v49  ;;  %v1099_v45 = vrot.slane %v1092_v29, %v1098_v43  ;;  %v1105_v47 = vrot.slane %v1093_v31, %v1098_v43  ;;  %v255_v52 = vadd.f32 %v254_v24, %v242_v63 }
  0x52   : > { %492 = vperm.xlu1 %977, %v434_v48  }
  0x53   : > { %v274_v62 = vrot.slane %v273_v58, 4  ;;  %v335_v54 = vrot.slane %v1105_v47, 4  ;;  %v256_v57 = vadd.f32 %v255_v52, %v244_v21  ;;  %487 = vperm.xlu0 %976, %v433_v53   ;;  %v318_v31 = vrot.slane %v1099_v45, 4 }
  0x55   : > { %v275_v16 = vadd.f32 %v274_v62, %v273_v58  ;;  %v336_v58 = vadd.f32 %v1105_v47, %v335_v54  ;;  %v257_v61 = vrot.slane %v256_v57, 4  ;;  %v319_v36 = vadd.f32 %v1099_v45, %v318_v31 }
  0x57   : > { %v276_v50 = vrot.slane %v275_v16, 2  ;;  %v337_v62 = vrot.slane %v336_v58, 2  ;;  %v258_v13 = vadd.f32 %v257_v61, %v256_v57  ;;  %v320_v43 = vrot.slane %v319_v36, 2 }
  0x59   : > { %v277_v56 = vadd.f32 %v276_v50, %v275_v16  ;;  %v338_v25 = vadd.f32 %v337_v62, %v336_v58  ;;  %v259_v24 = vrot.slane %v258_v13, 2  ;;  %v321_v50 = vadd.f32 %v320_v43, %v319_v36 }
  0x5b   : > { %v278_v60 = vrot.slane %v277_v56, 1  ;;  %v339_v29 = vrot.slane %v338_v25, 1  ;;  %v260_v33 = vadd.f32 %v259_v24, %v258_v13  ;;  %v322_v54 = vrot.slane %v321_v50, 1 }
  0x5d   : > { %v279_v10 = vadd.f32 %v278_v60, %v277_v56  ;;  %v340_v35 = vadd.f32 %v339_v29, %v338_v25  ;;  %v261_v39 = vrot.slane %v260_v33, 1  ;;  %v323_v56 = vadd.f32 %v322_v54, %v321_v50 }
  0x5f   : > { %v1454_v27 = vmul.f32 0.010416667, %v279_v10  ;;  %v342_v41 = vmul.f32 0.010416667, %v340_v35  ;;  %v262_v47 = vadd.f32 %v261_v39, %v260_v33  ;;  %v341_v58 = vmul.f32 0.010416667, %v323_v56 }
  0x61   : > { %v344_v16 = vmul.f32 %v1454_v27, %v1454_v27  ;;  %v1458_v52 = vmul.f32 0.010416667, %v262_v47  ;;  %v348_v45 = vsub.f32 %v223_v5, %v1454_v27  ;;  %v350_v62 = vsub.f32 %v225_v6, %v1454_v27 }
  0x62   : > { %v352_v24 = vsub.f32 %v227_v7, %v1454_v27  ;;  %v354_v29 = vsub.f32 %v229_v9, %v1454_v27  ;;  %v356_v1 = vsub.f32 %v231_v12, %v1454_v27  ;;  %v358_v2 = vsub.f32 %v233_v15, %v1454_v27 }
  0x63   : > { %v346_v48 = vsub.f32 %v342_v41, %v344_v16  ;;  %v343_v57 = vmul.f32 %v1458_v52, %v1458_v52  ;;  %v347_v6 = vsub.f32 %v222_v17, %v1458_v52  ;;  %v349_v31 = vsub.f32 %v224_v18, %v1458_v52 }
  0x64   : > { %v351_v33 = vsub.f32 %v226_v22, %v1458_v52  ;;  %v353_v7 = vsub.f32 %v228_v28, %v1458_v52  ;;  %v355_v3 = vsub.f32 %v230_v34, %v1458_v52  ;;  %v357_v4 = vsub.f32 %v232_v40, %v1458_v52 }
  0x65   : > { %v372_v53 = vadd.f32 1e-05, %v346_v48  ;;  %v345_v60 = vsub.f32 %v341_v58, %v343_v57  ;;  %v360_v18 = vsub.f32 %v235_v20, %v1454_v27  ;;  %v362_v8 = vsub.f32 %v237_v26, %v1454_v27 }
  0x66   : > { %v359_v11 = vsub.f32 %v234_v46, %v1458_v52  ;;  %v361_v20 = vsub.f32 %v236_v51, %v1458_v52  ;;  %v364_v40 = vsub.f32 %v239_v32, %v1454_v27  ;;  %v366_v41 = vsub.f32 %v241_v38, %v1454_v27 }
  0x67   : > { %984 = vrsqrt.f32 %v372_v53  ;;  %v371_v61 = vadd.f32 1e-05, %v345_v60  ;;  %v363_v32 = vsub.f32 %v238_v55, %v1458_v52  ;;  %v365_v38 = vsub.f32 %v240_v59, %v1458_v52 }
  0x68   : > { %v368_v51 = vsub.f32 %v243_v44, %v1454_v27  ;;  %v370_v48 = vsub.f32 %v245_v49, %v1454_v27  ;;  %v367_v44 = vsub.f32 %v242_v63, %v1458_v52  ;;  %v369_v49 = vsub.f32 %v244_v21, %v1458_v52  ;;  %v978_v52 = vld [vmem:[%s1651_s1] sm:$0xff]  }
  0x69   : > { %986 = vrsqrt.f32 %v371_v61 }
  0x71   : > { %v1468_v10 = vpop.eup %984 }
  0x72   : > { %v376_v13 = vmul.f32 %v1468_v10, %v348_v45  ;;  %v378_v25 = vmul.f32 %v1468_v10, %v350_v62  ;;  %v380_v9 = vmul.f32 %v1468_v10, %v352_v24  ;;  %v382_v35 = vmul.f32 %v1468_v10, %v354_v29  ;;  %v979_v45 = vld [vmem:[%s1651_s1 + $0x18] sm:$0xff]   ;;  %v980_v62 = vld [vmem:[%s1651_s1 + $0x8] sm:$0xff]  }
  0x73   : > { %v987_v17 = vpop.eup %986  ;;  %v384_v15 = vmul.f32 %v1468_v10, %v356_v1  ;;  %v386_v39 = vmul.f32 %v1468_v10, %v358_v2  ;;  %v388_v46 = vmul.f32 %v1468_v10, %v360_v18  ;;  %v390_v19 = vmul.f32 %v1468_v10, %v362_v8 }
  0x74   : > { %v412_v5 = vpack.c.bf16 %v378_v25, %v376_v13  ;;  %v375_v22 = vmul.f32 %v987_v17, %v347_v6  ;;  %v377_v28 = vmul.f32 %v987_v17, %v349_v31  ;;  %v379_v12 = vmul.f32 %v987_v17, %v351_v33  ;;  %v982_v13 = vld [vmem:[%s1651_s1 + $0x10] sm:$0xff]   ;;  %v983_v25 = vld [vmem:[%s1651_s1 + $0x28] sm:$0xff]  }
  0x75   : > { %v381_v16 = vmul.f32 %v987_v17, %v353_v7  ;;  %v414_v36 = vpack.c.bf16 %v382_v35, %v380_v9  ;;  %v383_v43 = vmul.f32 %v987_v17, %v355_v3  ;;  %v385_v47 = vmul.f32 %v987_v17, %v357_v4 }
  0x76   : > { %544 = vmatprep.subr.bf16.mxu0 %v412_v5  ;;  %893 = vmatprep.subr.bf16.mxu1 %v412_v5  ;;  %v411_v34 = vpack.c.bf16 %v377_v28, %v375_v22  ;;  %v416_v14 = vpack.c.bf16 %v386_v39, %v384_v15  ;;  %v387_v53 = vmul.f32 %v987_v17, %v359_v11 }
  0x77   : > { %v413_v26 = vpack.c.bf16 %v381_v16, %v379_v12  ;;  %v415_v50 = vpack.c.bf16 %v385_v47, %v383_v43  ;;  %v389_v54 = vmul.f32 %v987_v17, %v361_v20  ;;  %v418_v23 = vpack.c.bf16 %v390_v19, %v388_v46 }
  0x78   : > { %545 = vmatpush1.bf16.msra.mxu0 %v411_v34  ;;  %899 = vmatpush1.bf16.msra.mxu1 %v411_v34  ;;  %v392_v55 = vmul.f32 %v1468_v10, %v364_v40  ;;  %v394_v30 = vmul.f32 %v1468_v10, %v366_v41  ;;  %v391_v27 = vmul.f32 %v987_v17, %v363_v32 }
  0x79   : > { %546 = vmatprep.subr.bf16.mxu0 %v414_v36  ;;  %894 = vmatprep.subr.bf16.mxu1 %v414_v36  ;;  %v417_v59 = vpack.c.bf16 %v389_v54, %v387_v53  ;;  %v393_v56 = vmul.f32 %v987_v17, %v365_v38  ;;  %v396_v58 = vmul.f32 %v1468_v10, %v368_v51 }
  0x7a   : > { %v420_v57 = vpack.c.bf16 %v394_v30, %v392_v55  ;;  %v398_v60 = vmul.f32 %v1468_v10, %v370_v48  ;;  %v395_v63 = vmul.f32 %v987_v17, %v367_v44  ;;  %v397_v61 = vmul.f32 %v987_v17, %v369_v49  ;;  %v981_v10 = vld [vmem:[%s1651_s1 + $0x20] sm:$0xff]  }
  0x7b   : > { %v419_v37 = vpack.c.bf16 %v393_v56, %v391_v27 }
  0x7c   : > { %547 = vmatpush1.bf16.msra.mxu0 %v413_v26  ;;  %900 = vmatpush1.bf16.msra.mxu1 %v413_v26  ;;  %v422_v42 = vpack.c.bf16 %v398_v60, %v396_v58  ;;  %v421_v21 = vpack.c.bf16 %v397_v61, %v395_v63 }
  0x7d   : > { %548 = vmatprep.subr.bf16.mxu0 %v416_v14  ;;  %895 = vmatprep.subr.bf16.mxu1 %v416_v14 }
  0x80   : > { %549 = vmatpush1.bf16.msra.mxu0 %v415_v50  ;;  %901 = vmatpush1.bf16.msra.mxu1 %v415_v50 }
  0x81   : > { %550 = vmatprep.subr.bf16.mxu0 %v418_v23  ;;  %896 = vmatprep.subr.bf16.mxu1 %v418_v23 }
  0x84   : > { %551 = vmatpush1.bf16.msra.mxu0 %v417_v59  ;;  %902 = vmatpush1.bf16.msra.mxu1 %v417_v59 }
  0x85   : > { %552 = vmatprep.subr.bf16.mxu0 %v420_v57  ;;  %897 = vmatprep.subr.bf16.mxu1 %v420_v57 }
  0x88   : > { %553 = vmatpush1.bf16.msra.mxu0 %v419_v37  ;;  %903 = vmatpush1.bf16.msra.mxu1 %v419_v37 }
  0x89   : > { %554 = vmatprep.subr.bf16.mxu0 %v422_v42  ;;  %898 = vmatprep.subr.bf16.mxu1 %v422_v42 }
  0x8c   : > { %555 = vmatpush1.bf16.msra.mxu0 %v421_v21  ;;  %904 = vmatpush1.bf16.msra.mxu1 %v421_v21 }
  0x8f   : > { %860 = vmatmul.mubr.msk.bf16.vlgmr.msra.gmra.mrb[0].mxu0 %vm525_vm0, %v978_v52  ;;  %863 = vmatmul.mubr.msk.bf16.vlgmr.msra.gmra.mrb[0].mxu1 %vm525_vm0, %v979_v45 }
  0x90   : > { %586 = vmatprep.mubr.bf16.mxu0 %v1133_v0  ;;  %616 = vmatprep.mubr.bf16.mxu1 %v1133_v0 }
  0x97   : > { %861 = vmatmul.mubr.msk.bf16.gmra.mrb[4].mxu0 %vm525_vm0, %v980_v62  ;;  %864 = vmatmul.mubr.msk.bf16.gmra.mrb[4].mxu1 %vm525_vm0, %v981_v10 }
  0x98   : > { %596 = vmatprep.mubr.bf16.mxu0 %v1133_v0  ;;  %626 = vmatprep.mubr.bf16.mxu1 %v1133_v0 }
  0x9f   : > { %862 = vmatmul.mubr.msk.bf16.gmra.mrb[8].mxu0 %vm525_vm0, %v982_v13  ;;  %865 = vmatmul.mubr.msk.bf16.gmra.mrb[8].mxu1 %vm525_vm0, %v983_v25 }
  0xbd   : > { %v448_v24 = vpop.permute.xlu1 %447 }
  0xbe   : > { %v438_v29 = vpop.permute.xlu0 %437 }
  0xc1   : > { %v453_v5 = vpop.permute.xlu1 %452 }
  0xc2   : > { %v443_v6 = vpop.permute.xlu0 %442 }
  0xc5   : > { %v1570_v31 = vpop.permute.xlu1 %462 }
  0xc6   : > { %v1572_v33 = vpop.permute.xlu0 %457 }
  0xc9   : > { %v473_v7 = vpop.permute.xlu1 %472 }
  0xca   : > { %v468_v0 = vpop.permute.xlu0 %467 }
  0xcd   : > { %v483_v19 = vpop.permute.xlu1 %482 }
  0xce   : > { %v478_v32 = vpop.permute.xlu0 %477 }
 0x162   : > { %v578_v9 = vpop.f32.mrb[0].mxu0  ;;  %v608_v35 = vpop.f32.mrb[0].mxu1 }
 0x163   : > { %v579_v1 = vadd.f32 %v578_v9, %v438_v29  ;;  %v609_v2 = vadd.f32 %v608_v35, %v468_v0  ;;  %v580_v17 = vpop.f32.mrb[1].mxu0  ;;  %v610_v3 = vpop.f32.mrb[1].mxu1 }
 0x164   : > { %v581_v4 = vadd.f32 %v580_v17, %v438_v29  ;;  %v611_v18 = vadd.f32 %v610_v3, %v468_v0  ;;  %v582_v22 = vpop.f32.mrb[2].mxu0  ;;  %v612_v28 = vpop.f32.mrb[2].mxu1 }
 0x165   : > { %v637_v12 = vmax.f32 %v579_v1, 0.0  ;;  %v649_v16 = vmax.f32 %v609_v2, 0.0  ;;  %v583_v36 = vadd.f32 %v582_v22, %v443_v6  ;;  %v613_v15 = vadd.f32 %v612_v28, %v473_v7  ;;  %v584_v39 = vpop.f32.mrb[3].mxu0  ;;  %v614_v8 = vpop.f32.mrb[3].mxu1 }
 0x166   : > { %v638_v34 = vmax.f32 %v581_v4, 0.0  ;;  %v650_v11 = vmax.f32 %v611_v18, 0.0  ;;  %v585_v20 = vadd.f32 %v584_v39, %v443_v6  ;;  %v615_v40 = vadd.f32 %v614_v8, %v473_v7  ;;  %v488_v29 = vpop.permute.xlu0 %487 }
 0x167   : > { %v639_v41 = vmax.f32 %v583_v36, 0.0  ;;  %v651_v26 = vmax.f32 %v613_v15, 0.0 }
 0x168   : > { %v881_v43 = vpack.c.bf16 %v638_v34, %v637_v12  ;;  %v887_v47 = vpack.c.bf16 %v650_v11, %v649_v16  ;;  %v640_v14 = vmax.f32 %v585_v20, 0.0  ;;  %v652_v46 = vmax.f32 %v615_v40, 0.0 }
 0x16a   : > { %733 = vst [vmem:[%s1576_s23] sm:$0xff] %v881_v43  ;;  %739 = vst [vmem:[%s1576_s23 + $0x30] sm:$0xff] %v887_v47  ;;  %v882_v38 = vpack.c.bf16 %v640_v14, %v639_v41  ;;  %v888_v51 = vpack.c.bf16 %v652_v46, %v651_v26  ;;  %v588_v48 = vpop.f32.mrb[4].mxu0  ;;  %v618_v50 = vpop.f32.mrb[4].mxu1 }
 0x16b   : > { %v589_v53 = vadd.f32 %v588_v48, %v448_v24  ;;  %v619_v54 = vadd.f32 %v618_v50, %v478_v32  ;;  %v590_v23 = vpop.f32.mrb[5].mxu0  ;;  %v620_v55 = vpop.f32.mrb[5].mxu1 }
 0x16c   : > { %734 = vst [vmem:[%s1576_s23 + $0x8] sm:$0xff] %v882_v38  ;;  %740 = vst [vmem:[%s1576_s23 + $0x38] sm:$0xff] %v888_v51  ;;  %v591_v30 = vadd.f32 %v590_v23, %v448_v24  ;;  %v621_v44 = vadd.f32 %v620_v55, %v478_v32  ;;  %v592_v49 = vpop.f32.mrb[6].mxu0  ;;  %v622_v59 = vpop.f32.mrb[6].mxu1 }
 0x16d   : > { %v641_v27 = vmax.f32 %v589_v53, 0.0  ;;  %v653_v56 = vmax.f32 %v619_v54, 0.0  ;;  %v593_v57 = vadd.f32 %v592_v49, %v453_v5  ;;  %v623_v58 = vadd.f32 %v622_v59, %v483_v19  ;;  %v594_v60 = vpop.f32.mrb[7].mxu0  ;;  %v624_v37 = vpop.f32.mrb[7].mxu1 }
 0x16e   : > { %v642_v63 = vmax.f32 %v591_v30, 0.0  ;;  %v654_v61 = vmax.f32 %v621_v44, 0.0  ;;  %v595_v42 = vadd.f32 %v594_v60, %v453_v5  ;;  %v625_v21 = vadd.f32 %v624_v37, %v483_v19  ;;  %v493_v24 = vpop.permute.xlu1 %492 }
 0x16f   : > { %v643_v52 = vmax.f32 %v593_v57, 0.0  ;;  %v655_v45 = vmax.f32 %v623_v58, 0.0 }
 0x170   : > { %v883_v62 = vpack.c.bf16 %v642_v63, %v641_v27  ;;  %v889_v10 = vpack.c.bf16 %v654_v61, %v653_v56  ;;  %v644_v13 = vmax.f32 %v595_v42, 0.0  ;;  %v656_v25 = vmax.f32 %v625_v21, 0.0 }
 0x172   : > { %735 = vst [vmem:[%s1576_s23 + $0x10] sm:$0xff] %v883_v62  ;;  %741 = vst [vmem:[%s1576_s23 + $0x40] sm:$0xff] %v889_v10  ;;  %v884_v6 = vpack.c.bf16 %v644_v13, %v643_v52  ;;  %v890_v7 = vpack.c.bf16 %v656_v25, %v655_v45  ;;  %v598_v0 = vpop.f32.mrb[8].mxu0  ;;  %v628_v9 = vpop.f32.mrb[8].mxu1 }
 0x173   : > { %v599_v35 = vadd.f32 %v598_v0, %v1572_v33  ;;  %v629_v5 = vadd.f32 %v628_v9, %v488_v29  ;;  %v600_v1 = vpop.f32.mrb[9].mxu0  ;;  %v630_v2 = vpop.f32.mrb[9].mxu1 }
 0x174   : > { %736 = vst [vmem:[%s1576_s23 + $0x18] sm:$0xff] %v884_v6  ;;  %742 = vst [vmem:[%s1576_s23 + $0x48] sm:$0xff] %v890_v7  ;;  %v601_v17 = vadd.f32 %v600_v1, %v1572_v33  ;;  %v631_v3 = vadd.f32 %v630_v2, %v488_v29  ;;  %v602_v4 = vpop.f32.mrb[10].mxu0  ;;  %v632_v18 = vpop.f32.mrb[10].mxu1 }
 0x175   : > { %v645_v22 = vmax.f32 %v599_v35, 0.0  ;;  %v657_v28 = vmax.f32 %v629_v5, 0.0  ;;  %v603_v12 = vadd.f32 %v602_v4, %v1570_v31  ;;  %v633_v16 = vadd.f32 %v632_v18, %v493_v24  ;;  %v604_v36 = vpop.f32.mrb[11].mxu0  ;;  %v634_v15 = vpop.f32.mrb[11].mxu1 }
 0x176   : > { %v646_v39 = vmax.f32 %v601_v17, 0.0  ;;  %v658_v8 = vmax.f32 %v631_v3, 0.0  ;;  %v605_v34 = vadd.f32 %v604_v36, %v1570_v31  ;;  %v635_v33 = vadd.f32 %v634_v15, %v493_v24 }
 0x177   : > { %v647_v11 = vmax.f32 %v603_v12, 0.0  ;;  %v659_v20 = vmax.f32 %v633_v16, 0.0 }
 0x178   : > { %v885_v40 = vpack.c.bf16 %v646_v39, %v645_v22  ;;  %v891_v41 = vpack.c.bf16 %v658_v8, %v657_v28  ;;  %v648_v26 = vmax.f32 %v605_v34, 0.0  ;;  %v660_v43 = vmax.f32 %v635_v33, 0.0 }
 0x17a   : > { %737 = vst [vmem:[%s1576_s23 + $0x20] sm:$0xff] %v885_v40  ;;  %743 = vst [vmem:[%s1576_s23 + $0x50] sm:$0xff] %v891_v41  ;;  %v886_v31 = vpack.c.bf16 %v648_v26, %v647_v11  ;;  %v892_v47 = vpack.c.bf16 %v660_v43, %v659_v20 }
 0x17c   : > { %738 = vst [vmem:[%s1576_s23 + $0x28] sm:$0xff] %v886_v31  ;;  %744 = vst [vmem:[%s1576_s23 + $0x58] sm:$0xff] %v892_v47 }
 0x17d   : > { %1031 = shalt.err (!%p1028_p4)
}
 0x17e   : > { %s1032_s24 = scalar_lea.hbm %s1595_s15, 1536  ;;  %s1036_s9 = scalar_lea.hbm %s1653_s3, 3072 }
 0x17f   : > { %p1033_p6 = scmp.ne.s32.totalorder %s1595_s15, %s1032_s24  ;;  %p1037_p12 = scmp.lt.u32.totalorder %s1595_s15, %s1653_s3 }
 0x180   : > { %p1038_p1 = scmp.lt.u32.totalorder %s1036_s9, %s1032_s24  ;;  %p1040_p8 = scmp.lt.u32.totalorder %s1032_s24, %s1595_s15 }
 0x181   : > { %p1034_p7 = pnand %p1033_p6, %p1661_p9 }
 0x182   : > { %p1039_p3 = por %p1038_p1, %p1037_p12 }
 0x183   : > { %p1035_p10 = pneg %p1034_p7 }
 0x184   : > { %p1041_p11 = por %p1040_p8, %p1039_p3 }
 0x186   : > { %p1042_p0 = pnand %p1041_p11, %p1035_p10 }
 0x188   : > { %1045 = shalt.err (!%p1042_p0)
}
 0x189   : > { %s1136_s23 = smov 128   ;;  %s1137_s18 = smov 8  }
 0x18a   : > { %911 = dma.vmem_to_hbm [thread:$0]  (%p1661_p9), %s1597_s28, 1536, %s1595_s15, %s746_s5, %s1136_s23, %s1136_s23, %s1137_s18  }
 0x18b PF: > { %s776_s29 = sand.u32 1, %s1108_s12   ;;  %p1662_p5 = scmp.ne.s32.totalorder %s1658_s27, 0 }
 0x18c   : > { %p1663_p13 = scmp.ge.s32.totalorder %s1128_s17, 2  ;;  %s777_s30 = scalar_lea.sflag [#allocation4], %s776_s29 }
 0x18e   : > { %p918_p2 = pnand %p1663_p13, %p1662_p5 }
 0x190   : > { %1075 = dma.done.wait (!%p918_p2), %s777_s30, 1536  }
 0x191   : > { %1077 = vsyncadd (!%p918_p2), %s777_s30, 4294965760  ;;  %s19_s17 = sadd.s32 1, %s1128_s17   ;;  %s1664_s12 = smov %s1112_s13 }
 0x192   : > { %p16_p4 = scmp.ge.s32.totalorder %s19_s17, 4   ;;  %s1665_s13 = smov %s1116_s14 }
 0x193   : > { %s1666_s14 = smov %s1214_s26  ;;  %s1667_s15 = smov %s1124_s16 }
 0x194   : > { %s1668_s16 = smov %s1670_s20  ;;  %18 = sbr.rel (!%p16_p4) target bundleno = 6 (0x6), region = 77 }
 0x19b   :  { %782 = vsyncpa [#allocation3], 1 }
 0x19c   :  { %784 = vsyncpa [#allocation3 + $0x1], 1 }
 0x19d   :  { %785 = vsyncpa [#allocation4], 1 }
 0x19e   :  { %787 = vsyncpa [#allocation4 + $0x1], 1 }

</bundles_post_ra>
